<compile_context>
chip_gen: v7x
topology: tpu7x:2x2x1
jax: 0.10.0
libtpu: 0.0.40
codegen_flags: <defaults>
</compile_context>

<pallas_src>
import math

import jax
import jax.numpy as jnp
from jax.experimental import pallas as pl
from jax.experimental.pallas import tpu as pltpu


def _pe_add_kernel(x_ref, pe_ref, o_ref):
    # x_ref / o_ref: (B, TC) tile of flattened activations
    # pe_ref:        (1, TC) tile of flattened positional encodings (sublane-broadcast)
    o_ref[...] = x_ref[...] + pe_ref[...]


def _build_pe(seq_len, embed, dtype):
    """(seq_len, embed) PE table matching the torch buffer construction."""
    pos = jnp.arange(seq_len, dtype=jnp.float32)[:, None]                    # (S, 1)
    div = jnp.exp(jnp.arange(0, embed, 2, dtype=jnp.float32)
                  * jnp.float32(-math.log(10000.0) / embed))                 # (E/2,)
    ang = pos * div                                                          # (S, E/2)
    # interleave sin/cos -> columns 0::2 are sin, 1::2 are cos
    pe = jnp.stack([jnp.sin(ang), jnp.cos(ang)], axis=-1).reshape(seq_len, embed)
    return pe.astype(dtype)


def _vmem_budget_bytes():
    """Per-grid-step pipeline footprint budget (leaves headroom under the scoped limit)."""
    try:
        cap = getattr(pltpu.get_tpu_info(), "vmem_capacity_bytes", None)
        if cap:
            return int(min(cap // 4, 16 << 20))
    except Exception:
        pass
    return 12 << 20  # conservative default (fits v5e's small default scoped VMEM)


def _choose_block_cols(n_cols, batch, itemsize, budget_bytes):
    """Columns per tile of the flattened (B, S*E) array.

    Real per-step footprint: 2x double-buffered x (B rows) + 2x double-buffered
    out (B rows) + 2x double-buffered PE (1 row), all TC columns wide.
    """
    per_col_bytes = (4 * batch + 2) * itemsize
    tc = budget_bytes // max(1, per_col_bytes)
    if tc >= n_cols:
        return n_cols                       # single block spanning the full flattened row
    return max(128, (tc // 128) * 128)      # lane-dense: multiple of 128


def positional_encoding_layer(x, window_size, dropout_p=0.1, training=False,
                              block_cols=None):
    """x: (B, S, E) with S <= window_size. Returns x + PE (dropout identity in eval)."""
    B, S, E = x.shape
    assert S <= window_size, "sequence length must not exceed window_size"
    assert E % 2 == 0, "embedding_size must be even (matches torch 0::2 / 1::2 fill)"
    if training and dropout_p > 0.0:
        # TODO(synk): training-mode dropout (Bernoulli mask via pltpu.prng_*) not implemented.
        raise NotImplementedError("training-mode dropout not implemented")

    pe = _build_pe(S, E, x.dtype)           # (S, E), activation dtype

    # Flatten to lane-dense layout: (B, S*E). Row-major reshape is free and the
    # flattened PE row broadcasts across the batch (sublane) dimension in-kernel.
    N = S * E
    x2 = x.reshape(B, N)
    pe2 = pe.reshape(1, N)

    itemsize = jnp.dtype(x.dtype).itemsize
    tc = block_cols if block_cols is not None else _choose_block_cols(
        N, B, itemsize, _vmem_budget_bytes())
    if tc < N:
        assert tc % 128 == 0, "block_cols must be a multiple of 128 (lane-dense tiles)"
    num_tiles = pl.cdiv(N, tc)              # ragged last tile is masked by Pallas

    out2 = pl.pallas_call(
        _pe_add_kernel,
        out_shape=jax.ShapeDtypeStruct((B, N), x.dtype),
        grid=(num_tiles,),
        in_specs=[
            pl.BlockSpec((B, tc), lambda c: (0, c)),   # x tile
            pl.BlockSpec((1, tc), lambda c: (0, c)),   # PE tile (batch-broadcast)
        ],
        out_specs=pl.BlockSpec((B, tc), lambda c: (0, c)),
        input_output_aliases={0: 0},        # donate x -> out (same shape/dtype)
        compiler_params=pltpu.CompilerParams(
            dimension_semantics=("parallel",),
            vmem_limit_bytes=32 << 20,       # safe on v5e/v6e (128 MiB) and v7x (64 MiB)
        ),
    )(x2, pe2)

    return out2.reshape(B, S, E)


def _reference(x, window_size):
    """Pure-JAX reference reproducing the torch buffer construction."""
    B, S, E = x.shape
    position = jnp.arange(window_size, dtype=jnp.float32)[:, None]          # (W, 1)
    div_term = jnp.exp(jnp.arange(0, E, 2, dtype=jnp.float32)
                       * (-math.log(10000.0) / E))                          # (E/2,)
    pe = jnp.zeros((window_size, E), dtype=jnp.float32)
    pe = pe.at[:, 0::2].set(jnp.sin(position * div_term))
    pe = pe.at[:, 1::2].set(jnp.cos(position * div_term))
    return x + pe[None, :S, :]


if __name__ == "__main__":
    key = jax.random.PRNGKey(0)

    # Test 1: small shape matching the module spec (single lane-dense block).
    B, S, E = 2, 8, 32
    x = jax.random.normal(key, (B, S, E), dtype=jnp.float32)
    out = positional_encoding_layer(x, window_size=16, dropout_p=0.1, training=False)
    out = jax.block_until_ready(out)
    ref = _reference(x, 16)
    assert out.shape == ref.shape
    assert jnp.allclose(out, ref, atol=1e-5, rtol=1e-5), "mismatch vs reference (test 1)"

    # Test 2: multiple column tiles, ragged last tile (N = 3*12*96 -> 1152 cols, 512-wide tiles).
    B2, S2, E2 = 3, 12, 96
    x2 = jax.random.normal(jax.random.PRNGKey(1), (B2, S2, E2), dtype=jnp.float32)
    out2 = positional_encoding_layer(x2, window_size=32, dropout_p=0.1,
                                     training=False, block_cols=512)
    out2 = jax.block_until_ready(out2)
    ref2 = _reference(x2, 32)
    assert jnp.allclose(out2, ref2, atol=1e-5, rtol=1e-5), "mismatch vs reference (test 2)"

    # Test 3: E already a multiple of 128, even tiling.
    B3, S3, E3 = 2, 64, 128
    x3 = jax.random.normal(jax.random.PRNGKey(2), (B3, S3, E3), dtype=jnp.float32)
    out3 = positional_encoding_layer(x3, window_size=64, dropout_p=0.1,
                                     training=False, block_cols=2048)
    out3 = jax.block_until_ready(out3)
    ref3 = _reference(x3, 64)
    assert jnp.allclose(out3, ref3, atol=1e-5, rtol=1e-5), "mismatch vs reference (test 3)"

    print("KERNEL_OK")
</pallas_src>

<mosaic_0001>
module attributes {stable_mosaic.version = 11 : i64} {
  func.func @_pe_add_kernel(%arg0: i32, %arg1: memref<2x256xf32, #tpu.memory_space<vmem>>, %arg2: memref<1x256xf32, #tpu.memory_space<vmem>>, %arg3: memref<2x256xf32, #tpu.memory_space<vmem>>) attributes {dimension_semantics = [#tpu.dimension_semantics<parallel>], iteration_bounds = array<i64: 1>, scalar_prefetch = 0 : i64, scratch_operands = 0 : i64, tpu.core_type = #tpu.core_type<tc>, window_params = [{transform_indices = @transform_0, window_bounds = array<i64: 2, 256>}, {transform_indices = @transform_1, window_bounds = array<i64: 1, 256>}, {transform_indices = @transform_2, window_bounds = array<i64: 2, 256>}]} {
    %c0 = arith.constant 0 : index
    %c0_0 = arith.constant 0 : index
    %0 = vector.load %arg1[%c0, %c0_0] : memref<2x256xf32, #tpu.memory_space<vmem>>, vector<2x256xf32>
    %c0_1 = arith.constant 0 : index
    %c0_2 = arith.constant 0 : index
    %1 = vector.load %arg2[%c0_1, %c0_2] : memref<1x256xf32, #tpu.memory_space<vmem>>, vector<1x256xf32>
    %2 = vector.broadcast %1 : vector<1x256xf32> to vector<2x256xf32>
    %3 = arith.addf %0, %2 : vector<2x256xf32>
    %c0_3 = arith.constant 0 : index
    %c0_4 = arith.constant 0 : index
    %4 = vector.load %arg3[%c0_3, %c0_4] : memref<2x256xf32, #tpu.memory_space<vmem>>, vector<2x256xf32>
    tpu.vector_store %arg3[%c0_3, %c0_4], %3 {strides = array<i32>} : memref<2x256xf32, #tpu.memory_space<vmem>>, vector<2x256xf32>,
    return
  }
  func.func @transform_0(%arg0: i32) -> (i32, i32) {
    %c0_i32 = arith.constant 0 : i32
    %c0_i32_0 = arith.constant 0 : i32
    return %c0_i32, %arg0 : i32, i32
  }
  func.func @transform_1(%arg0: i32) -> (i32, i32) {
    %c0_i32 = arith.constant 0 : i32
    %c0_i32_0 = arith.constant 0 : i32
    return %c0_i32, %arg0 : i32, i32
  }
  func.func @transform_2(%arg0: i32) -> (i32, i32) {
    %c0_i32 = arith.constant 0 : i32
    %c0_i32_0 = arith.constant 0 : i32
    return %c0_i32, %arg0 : i32, i32
  }
}

</mosaic_0001>

<bundles_post_ra>
// kernel: tpu_custom_call.1
= control target key start
LH: loop header
LB: loop body
LE: loop exit
PB: predicated region body
PF: predicated region fallthrough
CT: control target
= control target key end

     0   :  { %7 = vsyncpa [#allocation3], 0  ;;  %s157_s0 = inlined_call_operand.hbm [shape: f32[2,256], index: 0, kind: input, shape index: {}, may-alias: {0,2}]   ;;  %s158_s1 = inlined_call_operand.vmem [shape: f32[1,256], index: 1, kind: input, shape index: {}]   ;;  %s159_s2 = inlined_call_operand.hbm [shape: f32[2,256], index: 2, kind: output, shape index: {}, may-alias: {0,2}]  }
   0x1   :  { %8 = vsyncpa [#allocation4], 0  ;;  %s112_s9 = smov [#allocation2]   ;;  %s64_s13 = scalar_lea.hbm %s157_s0, 64 }
   0x2   :  { %s15_s10 = sshll.u32 %s112_s9, 4  ;;  %p65_p0 = scmp.ne.s32.totalorder %s157_s0, %s64_s13  ;;  %s16_s10 = int_to_ptr.vmem [resolvable:$true] %s15_s10 }
   0x3   :  { %p68_p1 = scmp.lt.u32.totalorder %s64_s13, %s157_s0 }
   0x5   :  { %p70_p2 = pnand %p68_p1, %p65_p0 }
   0x7   :  { %73 = shalt.err (!%p70_p2)
}
   0x8   :  { %s74_s18 = scalar_lea.vmem %s16_s10, 64  ;;  %p79_p4 = scmp.lt.s32.totalorder %s16_s10, %s16_s10 }
   0x9   :  { %p75_p3 = scmp.ne.s32.totalorder %s16_s10, %s74_s18  ;;  %p80_p5 = scmp.lt.s32.totalorder %s74_s18, %s74_s18 }
   0xb   :  { %p81_p6 = por %p80_p5, %p79_p4 }
   0xd   :  { %p82_p7 = pnand %p81_p6, %p75_p3 }
   0xf   :  { %85 = shalt.err (!%p82_p7)
}
  0x10   :  { %18 = dma.hbm_to_vmem [thread:$0]  %s157_s0, 64, %s16_s10, [#allocation3]  }
  0x11   :  { %108 = dma.done.wait [#allocation3], 64  }
  0x12   :  { %109 = vsyncadd [#allocation3], 4294967232  ;;  %v27_v0 = vlaneseq  ;;  %v113_v1 = vmov 1983009808   ;;  %v25_v7 = vld [vmem:[%s158_s1] sm:$0x3] }
  0x13   :  { %v37_v2 = vunpack.c.l.s4 %v113_v1  ;;  %v24_v12 = vld [vmem:[#allocation2] sm:$0xf]  ;;  %s114_s23 = smov [#allocation5]  }
  0x14   :  { %v28_v3 = vshrl.u32 %v27_v0, 7  ;;  %s52_s0 = sshll.u32 %s114_s23, 4  ;;  %s53_s0 = int_to_ptr.vmem [resolvable:$true] %s52_s0 }
  0x15   :  { %v38_v6 = vunpack.c.0.s8 %v37_v2  ;;  %s86_s24 = scalar_lea.vmem %s53_s0, 64  ;;  %p91_p9 = scmp.lt.s32.totalorder %s53_s0, %s53_s0 }
  0x16   :  { %v29_v4 = vsub.s32 0, %v28_v3  ;;  %v33_v5 = vsub.s32 1, %v28_v3  ;;  %p87_p8 = scmp.ne.s32.totalorder %s53_s0, %s86_s24  ;;  %p92_p10 = scmp.lt.s32.totalorder %s86_s24, %s86_s24 }
  0x17   :  { %v41_v10 = vsub.s32 %v38_v6, %v28_v3 }
  0x18   :  { %v30_v8 = vrot.slane %v25_v7, %v29_v4  ;;  %v34_v9 = vrot.slane %v25_v7, %v33_v5  ;;  %p93_p11 = por %p92_p10, %p91_p9 }
  0x1a   :  { %v35_v11 = vcombine.low %v30_v8, %v34_v9  ;;  %p94_p12 = pnand %p93_p11, %p87_p8 }
  0x1c   :  { %v42_v13 = vrot.slane %v35_v11, %v41_v10 }
  0x1e   :  { %v44_v14 = vadd.f32 %v42_v13, %v24_v12 }
  0x20   :  { %45 = vst [vmem:[#allocation5] sm:$0xf] %v44_v14 }
  0x21   :  { %97 = shalt.err (!%p94_p12)
}
  0x22   :  { %s98_s26 = scalar_lea.hbm %s159_s2, 64 }
  0x23   :  { %p99_p13 = scmp.ne.s32.totalorder %s159_s2, %s98_s26  ;;  %p102_p0 = scmp.lt.u32.totalorder %s98_s26, %s159_s2 }
  0x25   :  { %p104_p1 = pnand %p102_p0, %p99_p13 }
  0x27   :  { %107 = shalt.err (!%p104_p1)
}
  0x28   :  { %55 = dma.vmem_to_hbm [thread:$0]  %s53_s0, 64, %s159_s2, [#allocation4]  }
  0x29   :  { %110 = dma.done.wait [#allocation4], 64  }
  0x2a   :  { %111 = vsyncadd [#allocation4], 4294967232 }
  0x2b   :  { %59 = vsyncpa [#allocation3], 1 }
  0x2c   :  { %60 = vsyncpa [#allocation4], 1 }

</bundles_post_ra>
